<compile_context>
chip_gen: v7x
topology: tpu7x:2x2x1
jax: 0.10.0
libtpu: 0.0.40
codegen_flags: <defaults>
</compile_context>

<pallas_src>
import functools

import jax
import jax.numpy as jnp
from jax.experimental import pallas as pl
from jax.experimental.pallas import tpu as pltpu


# ---------------------------------------------------------------------------
# Kernel
# ---------------------------------------------------------------------------
def _moe_gate_kernel(x_ref, w_ref, idx_ref, score_ref, acc_ref, *, top_k: int):
    # x_ref:    (tm, tk)  compute dtype (bf16 by default)
    # w_ref:    (E,  tk)  compute dtype
    # idx_ref:  (K,  tm)  i32
    # score_ref:(K,  tm)  f32
    # acc_ref:  (E,  tm)  f32 logits accumulator (persists across the H-reduction axis)
    k = pl.program_id(1)

    @pl.when(k == 0)
    def _():
        acc_ref[...] = jnp.zeros_like(acc_ref)

    # Partial gate logits on the MXU, transposed: logits[e, t] += sum_h w[e,h] * x[t,h]
    acc_ref[...] += jax.lax.dot_general(
        w_ref[...], x_ref[...],
        dimension_numbers=(((1,), (1,)), ((), ())),
        preferred_element_type=jnp.float32)                       # (E, tm) f32

    @pl.when(k == pl.num_programs(1) - 1)
    def _():
        logits = acc_ref[...]                                      # (E, tm)

        # Numerically-stable softmax pieces over the expert (sublane) axis.
        m = jnp.max(logits, axis=0, keepdims=True)                 # (1, tm)
        e = jnp.exp(logits - m)                                    # (E, tm)
        s = jnp.sum(e, axis=0, keepdims=True)                      # (1, tm)
        # EUP approx reciprocal + one Newton step (~f32 accuracy, no VALU divide).
        r = pl.reciprocal(s, approx=True)
        r = r * (2.0 - s * r)                                      # (1, tm)

        num_experts = e.shape[0]
        expert_iota = jax.lax.broadcasted_iota(jnp.int32, e.shape, 0)  # (E, tm)

        # Iterative top-k on the UNNORMALIZED exp values (softmax is monotone, so the
        # selection is identical); only the K winners get normalized.
        sel = e
        top_scores = []
        top_idx = []
        for _ in range(top_k):
            mk = jnp.max(sel, axis=0, keepdims=True)               # (1, tm)
            is_max = sel == mk
            # first index attaining the max (first-occurrence tie-break, = lax.top_k)
            idx = jnp.min(jnp.where(is_max, expert_iota, num_experts),
                          axis=0, keepdims=True).astype(jnp.int32)  # (1, tm)
            top_scores.append(mk * r)                              # normalize winner only
            top_idx.append(idx)
            sel = jnp.where(expert_iota == idx, -jnp.inf, sel)     # knock out winner

        # Single lane-dense store per output (tm is a multiple of 128).
        score_ref[...] = jnp.concatenate(top_scores, axis=0)       # (K, tm) f32
        idx_ref[...] = jnp.concatenate(top_idx, axis=0)            # (K, tm) i32


# ---------------------------------------------------------------------------
# Tiling heuristics (generation-aware VMEM budgeting)
# ---------------------------------------------------------------------------
_VMEM_TILE_BUDGET = 40 * 1024 * 1024   # budget for our buffers (headroom below limit)
_VMEM_LIMIT_BYTES = 48 * 1024 * 1024   # > v5e/v6e default scope, < v7x 64 MiB physical
_MAX_TOKEN_TILE = 8192


def _choose_tiles(T, H, E, top_k, dtype_bytes):
    """Pick (token_tile, hidden_tile) for the 2-D (token, hidden-reduction) grid."""
    # Hidden-reduction tile: split only when H is large; must divide H exactly.
    tk = H
    if H > 2048:
        for cand in (2048, 1024, 512, 256, 128):
            if H % cand == 0:
                tk = cand
                break

    def vmem_usage(tm):
        x_buf = 2 * tm * tk * dtype_bytes           # double-buffered x tile
        w_buf = 2 * E * tk * dtype_bytes            # double-buffered w tile
        acc = E * tm * 4                            # f32 logits accumulator scratch
        outs = 2 * top_k * tm * (4 + 4) * 2         # double-buffered idx + score blocks
        return x_buf + w_buf + acc + outs

    tm = 128
    while tm < _MAX_TOKEN_TILE and vmem_usage(tm * 2) <= _VMEM_TILE_BUDGET:
        tm *= 2

    # Don't tile wider than the (128-padded) token count.
    tm = min(tm, 128 * pl.cdiv(T, 128))
    # Keep >= 2 grid steps when there is enough work so v7x's 2 TensorCores both run.
    if T > 2 * 128:
        tm = min(tm, 128 * pl.cdiv(pl.cdiv(T, 2), 128))
    return tm, tk


# ---------------------------------------------------------------------------
# Wrapper
# ---------------------------------------------------------------------------
def moe_gate(x, w_g, *, top_k: int, compute_dtype=jnp.bfloat16):
    """x: [B, S, H]; w_g: [E, H] (torch nn.Linear weight layout).

    Returns (topk_indices [B,S,K] int32, topk_scores [B,S,K] float32), matching
    MoEGate.forward (sorted=False -> a descending-ordered top-k set is valid).
    Inputs are streamed in `compute_dtype` (bf16 default; pass None to keep native).
    """
    B, S, H = x.shape
    E = w_g.shape[0]
    T = B * S

    x2d = x.reshape(T, H)
    if compute_dtype is not None:
        x2d = x2d.astype(compute_dtype)
        w_g = w_g.astype(compute_dtype)
    dtype_bytes = jnp.dtype(x2d.dtype).itemsize

    tm, tk = _choose_tiles(T, H, E, top_k, dtype_bytes)

    Tp = tm * pl.cdiv(T, tm)                     # pad tokens to a tile multiple
    if Tp != T:
        x2d = jnp.pad(x2d, ((0, Tp - T), (0, 0)))

    kernel = functools.partial(_moe_gate_kernel, top_k=top_k)

    idx_t, score_t = pl.pallas_call(
        kernel,
        out_shape=(
            jax.ShapeDtypeStruct((top_k, Tp), jnp.int32),
            jax.ShapeDtypeStruct((top_k, Tp), jnp.float32),
        ),
        grid_spec=pltpu.PrefetchScalarGridSpec(
            num_scalar_prefetch=0,
            grid=(Tp // tm, H // tk),            # (token tiles, H-reduction steps)
            in_specs=[
                pl.BlockSpec((tm, tk), lambda i, k: (i, k)),
                pl.BlockSpec((E, tk), lambda i, k: (0, k)),
            ],
            out_specs=[
                pl.BlockSpec((top_k, tm), lambda i, k: (0, i)),
                pl.BlockSpec((top_k, tm), lambda i, k: (0, i)),
            ],
            scratch_shapes=[pltpu.VMEM((E, tm), jnp.float32)],
        ),
        compiler_params=pltpu.CompilerParams(
            dimension_semantics=("parallel", "arbitrary"),
            vmem_limit_bytes=_VMEM_LIMIT_BYTES,
        ),
    )(x2d, w_g)

    # Tiny [K, Tp] -> [T, K] transpose + de-pad in plain JAX.
    idx = jnp.transpose(idx_t)[:T]
    scores = jnp.transpose(score_t)[:T]
    return idx.reshape(B, S, top_k), scores.reshape(B, S, top_k)


# ---------------------------------------------------------------------------
# Reference + test
# ---------------------------------------------------------------------------
def _reference(x, w_g, top_k):
    """Pure-JAX reference mirroring the PyTorch forward."""
    logits = jnp.einsum("bsh,eh->bse", x, w_g)
    scores = jax.nn.softmax(logits, axis=-1)
    topk_scores, topk_idx = jax.lax.top_k(scores, top_k)
    return topk_idx.astype(jnp.int32), topk_scores


if __name__ == "__main__":
    # config: n_experts_per_token=2, n_routed_experts=8, d_hidden=32
    TOP_K = 2
    NUM_EXPERTS = 8
    D_HIDDEN = 32
    B, S = 2, 8

    key = jax.random.PRNGKey(0)
    kx, kw = jax.random.split(key)
    x = jax.random.normal(kx, (B, S, D_HIDDEN), dtype=jnp.float32)
    # torch nn.Linear default init: U(-1/sqrt(fan_in), 1/sqrt(fan_in)), weight [E, H]
    bound = 1.0 / (D_HIDDEN ** 0.5)
    w_g = jax.random.uniform(kw, (NUM_EXPERTS, D_HIDDEN),
                             minval=-bound, maxval=bound, dtype=jnp.float32)

    idx, scores = moe_gate(x, w_g, top_k=TOP_K)
    jax.block_until_ready((idx, scores))

    # Reference that mirrors exactly what the kernel streams (bf16 inputs, f32 accum).
    ref_idx, ref_scores = _reference(
        x.astype(jnp.bfloat16).astype(jnp.float32),
        w_g.astype(jnp.bfloat16).astype(jnp.float32), TOP_K)
    assert jnp.allclose(scores, ref_scores, atol=1e-4, rtol=1e-4), "score mismatch"
    # NOTE: exact-tie index order may differ from torch.topk (implementation-defined);
    # first-occurrence tie-break matches jax.lax.top_k, which we verify against.
    assert jnp.array_equal(idx, ref_idx), "index mismatch"

    # Sanity vs the pure-f32 reference: bf16 gating only perturbs scores slightly.
    _, f32_scores = _reference(x, w_g, TOP_K)
    assert jnp.allclose(scores, f32_scores, atol=5e-3, rtol=5e-2), "f32 drift too large"

    print("KERNEL_OK")
</pallas_src>

<mosaic_0001>
module attributes {stable_mosaic.version = 11 : i64} {
  func.func @_moe_gate_kernel(%arg0: i32, %arg1: i32, %arg2: memref<128x32xbf16, #tpu.memory_space<vmem>>, %arg3: memref<8x32xbf16, #tpu.memory_space<vmem>>, %arg4: memref<2x128xi32, #tpu.memory_space<vmem>>, %arg5: memref<2x128xf32, #tpu.memory_space<vmem>>, %arg6: memref<8x128xf32, #tpu.memory_space<vmem>>) attributes {dimension_semantics = [#tpu.dimension_semantics<parallel>, #tpu.dimension_semantics<arbitrary>], iteration_bounds = array<i64: 1, 1>, scalar_prefetch = 0 : i64, scratch_operands = 1 : i64, tpu.core_type = #tpu.core_type<tc>, window_params = [{transform_indices = @transform_0, window_bounds = array<i64: 128, 32>}, {transform_indices = @transform_1, window_bounds = array<i64: 8, 32>}, {transform_indices = @transform_2, window_bounds = array<i64: 2, 128>}, {transform_indices = @transform_3, window_bounds = array<i64: 2, 128>}]} {
    %c0_i32 = arith.constant 0 : i32
    %0 = arith.cmpi eq, %arg1, %c0_i32 : i32
    %1 = arith.extui %0 : i1 to i32
    %c0_i32_0 = arith.constant 0 : i32
    %2 = arith.cmpi ne, %1, %c0_i32_0 : i32
    scf.if %2 {
      %cst_10 = arith.constant 0.000000e+00 : f32
      %12 = vector.broadcast %cst_10 : f32 to vector<8x128xf32>
      %c0_11 = arith.constant 0 : index
      %c0_12 = arith.constant 0 : index
      %13 = vector.load %arg6[%c0_11, %c0_12] : memref<8x128xf32, #tpu.memory_space<vmem>>, vector<8x128xf32>
      tpu.vector_store %arg6[%c0_11, %c0_12], %12 {strides = array<i32>} : memref<8x128xf32, #tpu.memory_space<vmem>>, vector<8x128xf32>,
    } else {
    }
    %c0 = arith.constant 0 : index
    %c0_1 = arith.constant 0 : index
    %3 = vector.load %arg6[%c0, %c0_1] : memref<8x128xf32, #tpu.memory_space<vmem>>, vector<8x128xf32>
    %c0_2 = arith.constant 0 : index
    %c0_3 = arith.constant 0 : index
    %4 = vector.load %arg3[%c0_2, %c0_3] : memref<8x32xbf16, #tpu.memory_space<vmem>>, vector<8x32xbf16>
    %c0_4 = arith.constant 0 : index
    %c0_5 = arith.constant 0 : index
    %5 = vector.load %arg2[%c0_4, %c0_5] : memref<128x32xbf16, #tpu.memory_space<vmem>>, vector<128x32xbf16>
    %cst = arith.constant dense<0.000000e+00> : vector<8x128xf32>
    %6 = tpu.matmul %4, %5, %cst {dimension_numbers = #tpu.dot_dimension_numbers<[1], [1], [0], [0], [0, 0, 1, 0], [], []>} : vector<8x32xbf16>, vector<128x32xbf16>, vector<8x128xf32> -> vector<8x128xf32>
    %7 = arith.addf %3, %6 : vector<8x128xf32>
    %c0_6 = arith.constant 0 : index
    %c0_7 = arith.constant 0 : index
    %8 = vector.load %arg6[%c0_6, %c0_7] : memref<8x128xf32, #tpu.memory_space<vmem>>, vector<8x128xf32>
    tpu.vector_store %arg6[%c0_6, %c0_7], %7 {strides = array<i32>} : memref<8x128xf32, #tpu.memory_space<vmem>>, vector<8x128xf32>,
    %c0_i32_8 = arith.constant 0 : i32
    %9 = arith.cmpi eq, %arg1, %c0_i32_8 : i32
    %10 = arith.extui %9 : i1 to i32
    %c0_i32_9 = arith.constant 0 : i32
    %11 = arith.cmpi ne, %10, %c0_i32_9 : i32
    scf.if %11 {
      %c0_10 = arith.constant 0 : index
      %c0_11 = arith.constant 0 : index
      %12 = vector.load %arg6[%c0_10, %c0_11] : memref<8x128xf32, #tpu.memory_space<vmem>>, vector<8x128xf32>
      %cst_12 = arith.constant dense<0xFF800000> : vector<128xf32>
      %13 = vector.multi_reduction <maximumf>, %12, %cst_12 [0] : vector<8x128xf32> to vector<128xf32>
      %14 = vector.shape_cast %13 : vector<128xf32> to vector<1x128xf32>
      %15 = vector.broadcast %14 : vector<1x128xf32> to vector<8x128xf32>
      %16 = arith.subf %12, %15 : vector<8x128xf32>
      %17 = math.exp %16 : vector<8x128xf32>
      %cst_13 = arith.constant dense<0.000000e+00> : vector<128xf32>
      %18 = vector.multi_reduction <add>, %17, %cst_13 [0] : vector<8x128xf32> to vector<128xf32>
      %19 = vector.shape_cast %18 : vector<128xf32> to vector<1x128xf32>
      %20 = tpu.reciprocal %19 {approx = true} : vector<1x128xf32> -> vector<1x128xf32>
      %21 = arith.mulf %19, %20 : vector<1x128xf32>
      %cst_14 = arith.constant 2.000000e+00 : f32
      %22 = vector.broadcast %cst_14 : f32 to vector<1x128xf32>
      %23 = arith.subf %22, %21 : vector<1x128xf32>
      %24 = arith.mulf %20, %23 : vector<1x128xf32>
      %25 = tpu.iota {dimensions = array<i32: 0>} : vector<8x128xi32>
      %cst_15 = arith.constant dense<0xFF800000> : vector<128xf32>
      %26 = vector.multi_reduction <maximumf>, %17, %cst_15 [0] : vector<8x128xf32> to vector<128xf32>
      %27 = vector.shape_cast %26 : vector<128xf32> to vector<1x128xf32>
      %28 = vector.broadcast %27 : vector<1x128xf32> to vector<8x128xf32>
      %29 = arith.cmpf oeq, %17, %28 : vector<8x128xf32>
      %c8_i32 = arith.constant 8 : i32
      %30 = vector.broadcast %c8_i32 : i32 to vector<8x128xi32>
      %31 = arith.select %29, %25, %30 : vector<8x128xi1>, vector<8x128xi32>
      %cst_16 = arith.constant dense<2147483647> : vector<128xi32>
      %32 = vector.multi_reduction <minsi>, %31, %cst_16 [0] : vector<8x128xi32> to vector<128xi32>
      %33 = vector.shape_cast %32 : vector<128xi32> to vector<1x128xi32>
      %34 = arith.mulf %27, %24 : vector<1x128xf32>
      %35 = vector.broadcast %33 : vector<1x128xi32> to vector<8x128xi32>
      %36 = arith.cmpi eq, %25, %35 : vector<8x128xi32>
      %cst_17 = arith.constant 0xFF800000 : f32
      %37 = vector.broadcast %cst_17 : f32 to vector<8x128xf32>
      %38 = arith.select %36, %37, %17 : vector<8x128xi1>, vector<8x128xf32>
      %cst_18 = arith.constant dense<0xFF800000> : vector<128xf32>
      %39 = vector.multi_reduction <maximumf>, %38, %cst_18 [0] : vector<8x128xf32> to vector<128xf32>
      %40 = vector.shape_cast %39 : vector<128xf32> to vector<1x128xf32>
      %41 = vector.broadcast %40 : vector<1x128xf32> to vector<8x128xf32>
      %42 = arith.cmpf oeq, %38, %41 : vector<8x128xf32>
      %c8_i32_19 = arith.constant 8 : i32
      %43 = vector.broadcast %c8_i32_19 : i32 to vector<8x128xi32>
      %44 = arith.select %42, %25, %43 : vector<8x128xi1>, vector<8x128xi32>
      %cst_20 = arith.constant dense<2147483647> : vector<128xi32>
      %45 = vector.multi_reduction <minsi>, %44, %cst_20 [0] : vector<8x128xi32> to vector<128xi32>
      %46 = vector.shape_cast %45 : vector<128xi32> to vector<1x128xi32>
      %47 = arith.mulf %40, %24 : vector<1x128xf32>
      %48 = tpu.concatenate %34, %47 in 0 : vector<1x128xf32>, vector<1x128xf32> -> vector<2x128xf32>
      %c0_21 = arith.constant 0 : index
      %c0_22 = arith.constant 0 : index
      %49 = vector.load %arg5[%c0_21, %c0_22] : memref<2x128xf32, #tpu.memory_space<vmem>>, vector<2x128xf32>
      tpu.vector_store %arg5[%c0_21, %c0_22], %48 {strides = array<i32>} : memref<2x128xf32, #tpu.memory_space<vmem>>, vector<2x128xf32>,
      %50 = tpu.concatenate %33, %46 in 0 : vector<1x128xi32>, vector<1x128xi32> -> vector<2x128xi32>
      %c0_23 = arith.constant 0 : index
      %c0_24 = arith.constant 0 : index
      %51 = vector.load %arg4[%c0_23, %c0_24] : memref<2x128xi32, #tpu.memory_space<vmem>>, vector<2x128xi32>
      tpu.vector_store %arg4[%c0_23, %c0_24], %50 {strides = array<i32>} : memref<2x128xi32, #tpu.memory_space<vmem>>, vector<2x128xi32>,
    } else {
    }
    return
  }
  func.func @transform_0(%arg0: i32, %arg1: i32) -> (i32, i32) {
    %c0_i32 = arith.constant 0 : i32
    return %arg0, %arg1 : i32, i32
  }
  func.func @transform_1(%arg0: i32, %arg1: i32) -> (i32, i32) {
    %c0_i32 = arith.constant 0 : i32
    %c0_i32_0 = arith.constant 0 : i32
    return %c0_i32, %arg1 : i32, i32
  }
  func.func @transform_2(%arg0: i32, %arg1: i32) -> (i32, i32) {
    %c0_i32 = arith.constant 0 : i32
    %c0_i32_0 = arith.constant 0 : i32
    return %c0_i32, %arg0 : i32, i32
  }
  func.func @transform_3(%arg0: i32, %arg1: i32) -> (i32, i32) {
    %c0_i32 = arith.constant 0 : i32
    %c0_i32_0 = arith.constant 0 : i32
    return %c0_i32, %arg0 : i32, i32
  }
}

</mosaic_0001>

<bundles_post_ra>
// kernel: tpu_custom_call.1
= control target key start
LH: loop header
LB: loop body
LE: loop exit
PB: predicated region body
PF: predicated region fallthrough
CT: control target
= control target key end

     0   :  { %9 = vsyncpa [#allocation4], 0  ;;  %v347_v1 = vmov 0.0   ;;  %vm79_vm0 = vcmask 261120   ;;  %s433_s0 = inlined_call_operand.vmem [shape: bf16[128,32], index: 0, kind: input, shape index: {}]   ;;  %s434_s1 = inlined_call_operand.vmem [shape: bf16[8,32], index: 1, kind: input, shape index: {}]   ;;  %s435_s2 = inlined_call_operand.hbm [shape: s32[2,128], index: 2, kind: output, shape index: {0}]   ;;  %s436_s3 = inlined_call_operand.hbm [shape: f32[2,128], index: 3, kind: output, shape index: {1}]  }
   0x1   :  { %v287_v0 = vld [vmem:[%s433_s0] sm:$0xff]   ;;  %263 = vmatprep.subr.bf16.mxu0 %v347_v1  ;;  %v288_v3 = vld [vmem:[%s433_s0 + $0x8] sm:$0xff]  }
   0x2   :  { %v84_v2 = vsel %vm79_vm0, %v287_v0, 0  ;;  %v87_v4 = vsel %vm79_vm0, %v288_v3, 0 }
   0x3   :  { %264 = vmatpush3.bf16.xpose.msra.mxu0 %v84_v2 }
   0x4   :  { %265 = vmatprep.subr.bf16.mxu0 %v347_v1 }
   0x5   :  { %10 = vsyncpa [#allocation6], 0  ;;  %vm348_vm1 = vmmov 0   ;;  %v289_v5 = vld [vmem:[%s433_s0 + $0x10] sm:$0xff]   ;;  %v290_v7 = vld [vmem:[%s433_s0 + $0x18] sm:$0xff]   ;;  %v172_v36 = vlaneseq  ;;  %vm212_vm7 = vcmask 1040384  }
   0x6   :  { %279 = vmatprep.mubr.msk.bf16.mxu0 %vm348_vm1, %v347_v1  ;;  %v90_v6 = vsel %vm79_vm0, %v289_v5, 0  ;;  %v93_v8 = vsel %vm79_vm0, %v290_v7, 0  ;;  %v291_v9 = vld [vmem:[%s433_s0 + $0x20] sm:$0xff]   ;;  %v292_v11 = vld [vmem:[%s433_s0 + $0x28] sm:$0xff]   ;;  %v293_v13 = vld [vmem:[%s433_s0 + $0x30] sm:$0xff]  }
   0x7   :  { %v96_v10 = vsel %vm79_vm0, %v291_v9, 0  ;;  %v99_v12 = vsel %vm79_vm0, %v292_v11, 0  ;;  %v102_v14 = vsel %vm79_vm0, %v293_v13, 0  ;;  %v294_v15 = vld [vmem:[%s433_s0 + $0x38] sm:$0xff]   ;;  %v22_v17 = vld [vmem:[%s434_s1] sm:$0xf] }
   0x8   :  { %v105_v16 = vsel %vm79_vm0, %v294_v15, 0  ;;  %v173_v41 = vshrl.u32 %v172_v36, 7  ;;  %s349_s0 = smov [#allocation5]  }
   0x9   :  { %s233_s1 = sshll.u32 %s349_s0, 4  ;;  %s234_s1 = int_to_ptr.vmem [resolvable:$true] %s233_s1 }
   0xa   :  { %s299_s30 = scalar_lea.vmem %s234_s1, 32  ;;  %p304_p1 = scmp.lt.s32.totalorder %s234_s1, %s234_s1 }
   0xb   :  { %266 = vmatpush3.bf16.xpose.msra.mxu0 %v87_v4  ;;  %p300_p0 = scmp.ne.s32.totalorder %s234_s1, %s299_s30  ;;  %p305_p2 = scmp.lt.s32.totalorder %s299_s30, %s299_s30 }
   0xc   :  { %267 = vmatprep.subr.bf16.mxu0 %v347_v1 }
   0xd   :  { %p306_p3 = por %p305_p2, %p304_p1 }
   0xf   :  { %p307_p4 = pnand %p306_p3, %p300_p0 }
  0x13   :  { %268 = vmatpush3.bf16.xpose.msra.mxu0 %v90_v6 }
  0x14   :  { %269 = vmatprep.subr.bf16.mxu0 %v347_v1 }
  0x1b   :  { %270 = vmatpush3.bf16.xpose.msra.mxu0 %v93_v8 }
  0x1c   :  { %271 = vmatprep.subr.bf16.mxu0 %v347_v1 }
  0x23   :  { %272 = vmatpush3.bf16.xpose.msra.mxu0 %v96_v10 }
  0x24   :  { %273 = vmatprep.subr.bf16.mxu0 %v347_v1 }
  0x2b   :  { %274 = vmatpush3.bf16.xpose.msra.mxu0 %v99_v12 }
  0x2c   :  { %275 = vmatprep.subr.bf16.mxu0 %v347_v1 }
  0x33   :  { %276 = vmatpush3.bf16.xpose.msra.mxu0 %v102_v14 }
  0x34   :  { %277 = vmatprep.subr.bf16.mxu0 %v347_v1 }
  0x3b   :  { %278 = vmatpush3.bf16.xpose.msra.mxu0 %v105_v16 }
  0x42   :  { %280 = vmatmul.mubr.msk.bf16.vlgmr.msra.gmra.mrb[0].mxu0 %vm79_vm0, %v22_v17 }
 0x115   :  { %v141_v18 = vpop.f32.mrb[0].mxu0 }
 0x116   :  { %v153_v19 = vrot.slane %v141_v18, 4  ;;  %v281_v20 = vpop.f32.mrb[1].mxu0 }
 0x117   :  { %v144_v21 = vpop.f32.mrb[2].mxu0 }
 0x118   :  { %v154_v22 = vmax.f32 %v141_v18, %v153_v19  ;;  %v282_v23 = vpop.f32.mrb[3].mxu0 }
 0x11a   :  { %v155_v24 = vrot.slane %v154_v22, 2 }
 0x11c   :  { %v156_v25 = vmax.f32 %v154_v22, %v155_v24 }
 0x11e   :  { %v157_v26 = vrot.slane %v156_v25, 1 }
 0x120   :  { %v158_v27 = vmax.f32 %v156_v25, %v157_v26 }
 0x122   :  { %v159_v28 = vsub.f32 %v141_v18, %v158_v27 }
 0x124   :  { %v160_v29 = vmul.f32 1.442695, %v159_v28 }
 0x126   :  { %295 = vpow2.f32 %v160_v29 }
 0x130   :  { %v296_v30 = vpop.eup %295 }
 0x131   :  { %v162_v31 = vrot.slane %v296_v30, 4 }
 0x133   :  { %v175_v32 = vmax.f32 %v296_v30, %v162_v31  ;;  %v163_v33 = vadd.f32 %v296_v30, %v162_v31 }
 0x135   :  { %v176_v34 = vrot.slane %v175_v32, 2  ;;  %v164_v35 = vrot.slane %v163_v33, 2 }
 0x137   :  { %v177_v37 = vmax.f32 %v175_v32, %v176_v34  ;;  %v165_v38 = vadd.f32 %v164_v35, %v163_v33 }
 0x139   :  { %v178_v39 = vrot.slane %v177_v37, 1  ;;  %v166_v40 = vrot.slane %v165_v38, 1 }
 0x13b   :  { %v179_v42 = vmax.f32 %v177_v37, %v178_v39  ;;  %v167_v43 = vadd.f32 %v166_v40, %v165_v38 }
 0x13d   :  { %vm180_vm2 = vcmp.eq.f32.partialorder %v296_v30, %v179_v42  ;;  %297 = vrcp.f32 %v167_v43 }
 0x13e   :  { %v181_v44 = vsel %vm180_vm2, %v173_v41, 8 }
 0x13f   :  { %v182_v45 = vrot.slane %v181_v44, 4 }
 0x141   :  { %vm183_vm3 = vcmp.lt.s32.totalorder %v181_v44, %v182_v45 }
 0x142   :  { %v184_v46 = vsel %vm183_vm3, %v181_v44, %v182_v45 }
 0x143   :  { %v185_v47 = vrot.slane %v184_v46, 2 }
 0x145   :  { %vm186_vm4 = vcmp.lt.s32.totalorder %v184_v46, %v185_v47 }
 0x146   :  { %v187_v48 = vsel %vm186_vm4, %v184_v46, %v185_v47 }
 0x147   :  { %v188_v49 = vrot.slane %v187_v48, 1  ;;  %v298_v50 = vpop.eup %297 }
 0x148   :  { %v169_v54 = vmul.f32 %v298_v50, %v167_v43 }
 0x149   :  { %vm189_vm5 = vcmp.lt.s32.totalorder %v187_v48, %v188_v49 }
 0x14a   :  { %v190_v51 = vsel %vm189_vm5, %v187_v48, %v188_v49  ;;  %v170_v57 = vsub.f32 2.0, %v169_v54 }
 0x14b   :  { %vm192_vm6 = vcmp.eq.s32.totalorder %v173_v41, %v190_v51 }
 0x14c   :  { %v193_v52 = vsel %vm192_vm6, -inf, %v296_v30  ;;  %v171_v60 = vmul.f32 %v298_v50, %v170_v57 }
 0x14d   :  { %v194_v53 = vrot.slane %v193_v52, 4 }
 0x14e   :  { %v191_v62 = vmul.f32 %v179_v42, %v171_v60 }
 0x14f   :  { %v195_v55 = vmax.f32 %v193_v52, %v194_v53 }
 0x151   :  { %v196_v56 = vrot.slane %v195_v55, 2 }
 0x153   :  { %v197_v58 = vmax.f32 %v195_v55, %v196_v56 }
 0x155   :  { %v198_v59 = vrot.slane %v197_v58, 1 }
 0x157   :  { %v199_v61 = vmax.f32 %v197_v58, %v198_v59 }
 0x159   :  { %vm200_vm8 = vcmp.eq.f32.partialorder %v193_v52, %v199_v61  ;;  %v211_v63 = vmul.f32 %v199_v61, %v171_v60 }
 0x15a   :  { %v201_v0 = vsel %vm200_vm8, %v173_v41, 8 }
 0x15b   :  { %v202_v1 = vrot.slane %v201_v0, 4  ;;  %v213_v2 = vsel %vm212_vm7, %v191_v62, %v211_v63 }
 0x15c   :  { %214 = vst [vmem:[#allocation5] sm:$0x3] %v213_v2 }
 0x15d   :  { %vm203_vm9 = vcmp.lt.s32.totalorder %v201_v0, %v202_v1 }
 0x15e   :  { %310 = shalt.err (!%p307_p4)
}
 0x15f   :  { %s311_s6 = scalar_lea.hbm %s436_s3, 32 }
 0x160   :  { %p312_p5 = scmp.ne.s32.totalorder %s436_s3, %s311_s6  ;;  %p315_p6 = scmp.lt.u32.totalorder %s311_s6, %s436_s3 }
 0x162   :  { %p317_p7 = pnand %p315_p6, %p312_p5 }
 0x164   :  { %320 = shalt.err (!%p317_p7)
}
 0x165   :  { %236 = dma.vmem_to_hbm [thread:$0]  %s234_s1, 32, %s436_s3, [#allocation6]   ;;  %v204_v3 = vsel %vm203_vm9, %v201_v0, %v202_v1 }
 0x166   :  { %v205_v4 = vrot.slane %v204_v3, 2  ;;  %s350_s13 = smov [#allocation3]  }
 0x167   :  { %s223_s14 = sshll.u32 %s350_s13, 4  ;;  %s224_s14 = int_to_ptr.vmem [resolvable:$true] %s223_s14 }
 0x168   :  { %vm206_vm10 = vcmp.lt.s32.totalorder %v204_v3, %v205_v4  ;;  %s321_s15 = scalar_lea.vmem %s224_s14, 32  ;;  %p326_p9 = scmp.lt.s32.totalorder %s224_s14, %s224_s14 }
 0x169   :  { %v207_v5 = vsel %vm206_vm10, %v204_v3, %v205_v4  ;;  %p322_p8 = scmp.ne.s32.totalorder %s224_s14, %s321_s15  ;;  %p327_p10 = scmp.lt.s32.totalorder %s321_s15, %s321_s15 }
 0x16a   :  { %v208_v6 = vrot.slane %v207_v5, 1 }
 0x16b   :  { %p328_p11 = por %p327_p10, %p326_p9 }
 0x16c   :  { %vm209_vm11 = vcmp.lt.s32.totalorder %v207_v5, %v208_v6 }
 0x16d   :  { %v210_v7 = vsel %vm209_vm11, %v207_v5, %v208_v6  ;;  %p329_p12 = pnand %p328_p11, %p322_p8 }
 0x16e   :  { %v215_v8 = vsel %vm212_vm7, %v190_v51, %v210_v7 }
 0x16f   :  { %216 = vst [vmem:[#allocation3] sm:$0x3] %v215_v8 }
 0x170   :  { %332 = shalt.err (!%p329_p12)
}
 0x171   :  { %s333_s17 = scalar_lea.hbm %s435_s2, 32 }
 0x172   :  { %p334_p13 = scmp.ne.s32.totalorder %s435_s2, %s333_s17  ;;  %p337_p0 = scmp.lt.u32.totalorder %s333_s17, %s435_s2 }
 0x174   :  { %p339_p1 = pnand %p337_p0, %p334_p13 }
 0x176   :  { %342 = shalt.err (!%p339_p1)
}
 0x177   :  { %226 = dma.vmem_to_hbm [thread:$0]  %s224_s14, 32, %s435_s2, [#allocation4]  }
 0x178   :  { %343 = dma.done.wait [#allocation4], 32  }
 0x179   :  { %344 = vsyncadd [#allocation4], 4294967264 }
 0x17a   :  { %345 = dma.done.wait [#allocation6], 32  }
 0x17b   :  { %346 = vsyncadd [#allocation6], 4294967264 }
 0x17c   :  { %243 = vsyncpa [#allocation4], 1 }
 0x17d   :  { %244 = vsyncpa [#allocation6], 1 }

</bundles_post_ra>
